<compile_context>
chip_gen: v7x
topology: tpu7x:2x2x1
jax: 0.10.0
libtpu: 0.0.40
codegen_flags: <defaults>
</compile_context>

<pallas_src>
import functools

import jax
import jax.numpy as jnp
from jax.experimental import pallas as pl
from jax.experimental.pallas import tpu as pltpu

EPS = 1e-5          # nn.BatchNorm2d default eps
NEG_SLOPE = 0.2     # LeakyReLU(0.2)
CP = 128            # lane-dense padded channel width
TM_MAX = 512        # max rows per M tile


def _round_up(x, m):
    return (x + m - 1) // m * m


# ----------------------------------------------------------------------------
# Plain-JAX glue: layout + im2col (3x3 kernel, padding=1, arbitrary stride).
# TODO(synk): fold the im2col into the kernels (9 shifted accumulating dots or
# an index_map-driven gather) to avoid the 9x HBM expansion of the patches.
# ----------------------------------------------------------------------------
def _im2col_nhwc(x, stride):
    # x: [N, H, W, C] -> col: [N*H_out*W_out, 9*C]
    # rows ordered (n, h, w); column index = (ki*3 + kj)*C + c
    N, H, W, C = x.shape
    xp = jnp.pad(x, ((0, 0), (1, 1), (1, 1), (0, 0)))
    H_out = (H + 2 - 3) // stride + 1
    W_out = (W + 2 - 3) // stride + 1
    patches = [
        xp[:, ki:ki + stride * H_out:stride, kj:kj + stride * W_out:stride, :]
        for ki in range(3) for kj in range(3)
    ]
    col = jnp.stack(patches, axis=3)              # [N, Ho, Wo, 9, C]
    return col.reshape(N * H_out * W_out, 9 * C), H_out, W_out


def _wmat(w):
    # PyTorch weight [C_out, C_in, 3, 3] -> [9*C_in, C_out] matching im2col cols.
    c_out, c_in = w.shape[0], w.shape[1]
    return jnp.transpose(w, (2, 3, 1, 0)).reshape(9 * c_in, c_out)


# ----------------------------------------------------------------------------
# Pallas kernels
# ----------------------------------------------------------------------------
def _matmul_stats_kernel(xcol_ref, w_ref, stats_ref):
    """Pass 1: per-tile partial per-channel sum / sum-of-squares of y = x @ w."""
    y = jnp.dot(xcol_ref[...], w_ref[...], preferred_element_type=jnp.float32)
    s = jnp.sum(y, axis=0, keepdims=True)         # [1, CP]
    ss = jnp.sum(y * y, axis=0, keepdims=True)    # [1, CP]
    row = jax.lax.broadcasted_iota(jnp.int32, stats_ref.shape, 0)
    s_b = jnp.broadcast_to(s, stats_ref.shape)
    ss_b = jnp.broadcast_to(ss, stats_ref.shape)
    stats_ref[...] = jnp.where(row == 0, s_b,
                               jnp.where(row == 1, ss_b, jnp.zeros_like(s_b)))


def _matmul_bn_act_kernel(xcol_ref, w_ref, scale_ref, shift_ref, slope_ref, o_ref):
    """Pass 2: matmul + folded BatchNorm affine + per-channel LeakyReLU."""
    y = jnp.dot(xcol_ref[...], w_ref[...], preferred_element_type=jnp.float32)
    out = y * scale_ref[...] + shift_ref[...]
    out = jnp.where(out >= 0.0, out, slope_ref[...] * out)
    o_ref[...] = out


def _matmul_bn_act_res_kernel(xcol_ref, w_ref, scale_ref, shift_ref, slope_ref,
                              res_ref, o_ref):
    """Pass 2 with the residual add fused into the epilogue."""
    y = jnp.dot(xcol_ref[...], w_ref[...], preferred_element_type=jnp.float32)
    out = y * scale_ref[...] + shift_ref[...]
    out = jnp.where(out >= 0.0, out, slope_ref[...] * out)
    o_ref[...] = out + res_ref[...]


# ----------------------------------------------------------------------------
# Fused Conv(3x3) + training-mode BatchNorm + LeakyReLU [+ residual]
# ----------------------------------------------------------------------------
def _conv_bn_act(xcol, wpad, gamma_p, beta_p, slope_p, m_true, residual=None):
    """xcol: [M, K]; wpad: [K, CP]; gamma/beta/slope padded to CP.

    Returns [Mp, CP]; rows >= m_true and columns >= the real C_out are padding.
    Padded (all-zero) rows contribute 0 to both sum and sum-of-squares (no
    bias term), so dividing by m_true gives exact batch statistics.
    """
    M, K = xcol.shape
    assert wpad.shape == (K, CP)
    TM = min(TM_MAX, _round_up(M, 8))
    Mp = _round_up(M, TM)
    nt = Mp // TM
    xcol_p = jnp.pad(xcol, ((0, Mp - M), (0, 0))) if Mp != M else xcol

    cparams = pltpu.CompilerParams(
        dimension_semantics=("parallel",),
        vmem_limit_bytes=32 * 1024 * 1024)

    # Pass 1: partial per-channel stats, one (8, CP) block per M tile.
    stats = pl.pallas_call(
        _matmul_stats_kernel,
        out_shape=jax.ShapeDtypeStruct((nt * 8, CP), jnp.float32),
        grid=(nt,),
        in_specs=[
            pl.BlockSpec((TM, K), lambda i: (i, 0)),
            pl.BlockSpec((K, CP), lambda i: (0, 0)),
        ],
        out_specs=pl.BlockSpec((8, CP), lambda i: (i, 0)),
        compiler_params=cparams,
    )(xcol_p, wpad)

    # Tiny cross-tile reduction + BN affine folding in plain JAX.
    tot = stats.reshape(nt, 8, CP).sum(axis=0)    # [8, CP]
    mean = tot[0] / m_true
    var = jnp.maximum(tot[1] / m_true - mean * mean, 0.0)
    inv = jax.lax.rsqrt(var + EPS)
    scale = (gamma_p * inv).reshape(1, CP).astype(jnp.float32)
    shift = (beta_p - mean * gamma_p * inv).reshape(1, CP).astype(jnp.float32)
    slope = slope_p.reshape(1, CP).astype(jnp.float32)

    if residual is None:
        kern = _matmul_bn_act_kernel
        extra_in, extra_specs = (), ()
    else:
        assert residual.shape == (Mp, CP)
        kern = _matmul_bn_act_res_kernel
        extra_in = (residual,)
        extra_specs = (pl.BlockSpec((TM, CP), lambda i: (i, 0)),)

    out = pl.pallas_call(
        kern,
        out_shape=jax.ShapeDtypeStruct((Mp, CP), jnp.float32),
        grid=(nt,),
        in_specs=[
            pl.BlockSpec((TM, K), lambda i: (i, 0)),
            pl.BlockSpec((K, CP), lambda i: (0, 0)),
            pl.BlockSpec((1, CP), lambda i: (0, 0)),
            pl.BlockSpec((1, CP), lambda i: (0, 0)),
            pl.BlockSpec((1, CP), lambda i: (0, 0)),
            *extra_specs,
        ],
        out_specs=pl.BlockSpec((TM, CP), lambda i: (i, 0)),
        compiler_params=cparams,
    )(xcol_p, wpad, scale, shift, slope, *extra_in)
    return out


def _pad_c(v, value=0.0):
    v = v.astype(jnp.float32)
    return jnp.pad(v, (0, CP - v.shape[0]), constant_values=value)


def res_block_down(x, params, act=True):
    """Forward of ResBlockDown(filters_in, filters_out, act). x: NCHW float32."""
    N, C_in, H, W = x.shape
    f_in = params["w1"].shape[0]
    f_out = params["w2"].shape[0]
    assert C_in == f_in

    # NCHW -> NHWC once at entry.
    x_nhwc = jnp.transpose(x, (0, 2, 3, 1))

    # ---- Stage A: conv3 (stride 2, f_in->f_out) and conv1 (stride 2,
    # f_in->f_in) share one im2col and are fused into one matmul. conv3
    # channels come first so the result feeds straight in as conv2's residual.
    xcol_a, H2, W2 = _im2col_nhwc(x_nhwc, stride=2)
    M = N * H2 * W2

    w13 = jnp.concatenate([_wmat(params["w3"]), _wmat(params["w1"])], axis=1)
    w13 = jnp.pad(w13, ((0, 0), (0, CP - w13.shape[1]))).astype(jnp.float32)
    g13 = _pad_c(jnp.concatenate([params["g3"], params["g1"]]))
    be13 = _pad_c(jnp.concatenate([params["be3"], params["be1"]]))
    # Per-channel LeakyReLU slope: conv3 activated only if `act`; conv1 always.
    slope13 = _pad_c(jnp.concatenate([
        jnp.full((f_out,), NEG_SLOPE if act else 1.0, jnp.float32),
        jnp.full((f_in,), NEG_SLOPE, jnp.float32)]), value=1.0)
    # NOTE: conv biases (b1/b2/b3) are intentionally unused -- they cancel
    # exactly under training-mode BatchNorm.
    a13 = _conv_bn_act(xcol_a, w13, g13, be13, slope13, M)

    conv1_nhwc = a13[:M, f_out:f_out + f_in].reshape(N, H2, W2, f_in)

    # ---- Stage B: conv2 (stride 1, f_in -> f_out), residual (conv3 = first
    # f_out columns of a13) added inside the kernel epilogue.
    xcol_b, _, _ = _im2col_nhwc(conv1_nhwc, stride=1)
    w2 = jnp.pad(_wmat(params["w2"]),
                 ((0, 0), (0, CP - f_out))).astype(jnp.float32)
    g2 = _pad_c(params["g2"])
    be2 = _pad_c(params["be2"])
    slope2 = _pad_c(jnp.full((f_out,), NEG_SLOPE if act else 1.0, jnp.float32),
                    value=1.0)
    out = _conv_bn_act(xcol_b, w2, g2, be2, slope2, M, residual=a13)

    out_nhwc = out[:M, :f_out].reshape(N, H2, W2, f_out)
    # NHWC -> NCHW once at exit.
    return jnp.transpose(out_nhwc, (0, 3, 1, 2))


# ----------------------------------------------------------------------------
# Pure-JAX reference (uses the conv biases, proving they cancel under BN)
# ----------------------------------------------------------------------------
def _ref_conv(x, w, b, stride):
    y = jax.lax.conv_general_dilated(
        x, w, (stride, stride), ((1, 1), (1, 1)),
        dimension_numbers=("NCHW", "OIHW", "NCHW"))
    return y + b.reshape(1, -1, 1, 1)


def _ref_bn(y, gamma, beta):
    mean = y.mean(axis=(0, 2, 3), keepdims=True)
    var = ((y - mean) ** 2).mean(axis=(0, 2, 3), keepdims=True)
    return gamma.reshape(1, -1, 1, 1) * (y - mean) / jnp.sqrt(var + EPS) \
        + beta.reshape(1, -1, 1, 1)


def _ref_lrelu(x):
    return jnp.where(x >= 0.0, x, NEG_SLOPE * x)


def res_block_down_ref(x, p, act=True):
    c1 = _ref_lrelu(_ref_bn(_ref_conv(x, p["w1"], p["b1"], 2), p["g1"], p["be1"]))
    c2 = _ref_bn(_ref_conv(c1, p["w2"], p["b2"], 1), p["g2"], p["be2"])
    c3 = _ref_bn(_ref_conv(x, p["w3"], p["b3"], 2), p["g3"], p["be3"])
    if act:
        c2 = _ref_lrelu(c2)
        c3 = _ref_lrelu(c3)
    return c2 + c3


# ----------------------------------------------------------------------------
# Main
# ----------------------------------------------------------------------------
if __name__ == "__main__":
    # Module config: ResBlockDown(filters_in=4, filters_out=8, act=True)
    N, F_IN, F_OUT, H, W = 2, 4, 8, 16, 16

    key = jax.random.PRNGKey(0)
    ks = jax.random.split(key, 13)

    def _w(k, shape, scale=0.1):
        return (scale * jax.random.normal(k, shape)).astype(jnp.float32)

    params = {
        # conv1_block: Conv2d(F_IN, F_IN, 3, stride=2, pad=1) + BN(F_IN) + LeakyReLU
        "w1": _w(ks[0], (F_IN, F_IN, 3, 3)),
        "b1": _w(ks[1], (F_IN,)),
        "g1": 1.0 + _w(ks[2], (F_IN,)),
        "be1": _w(ks[3], (F_IN,)),
        # conv2_block: Conv2d(F_IN, F_OUT, 3, stride=1, pad=1) + BN(F_OUT)
        "w2": _w(ks[4], (F_OUT, F_IN, 3, 3)),
        "b2": _w(ks[5], (F_OUT,)),
        "g2": 1.0 + _w(ks[6], (F_OUT,)),
        "be2": _w(ks[7], (F_OUT,)),
        # conv3_block: Conv2d(F_IN, F_OUT, 3, stride=2, pad=1) + BN(F_OUT)
        "w3": _w(ks[8], (F_OUT, F_IN, 3, 3)),
        "b3": _w(ks[9], (F_OUT,)),
        "g3": 1.0 + _w(ks[10], (F_OUT,)),
        "be3": _w(ks[11], (F_OUT,)),
    }

    x = jax.random.normal(ks[12], (N, F_IN, H, W), dtype=jnp.float32)

    fwd = jax.jit(functools.partial(res_block_down, act=True))
    out = jax.block_until_ready(fwd(x, params))
    ref = jax.block_until_ready(res_block_down_ref(x, params, act=True))

    assert out.shape == (N, F_OUT, H // 2, W // 2), out.shape
    max_err = float(jnp.max(jnp.abs(out - ref)))
    assert jnp.allclose(out, ref, rtol=1e-3, atol=1e-3), \
        f"max abs err = {max_err}"

    print("KERNEL_OK")
</pallas_src>

<mosaic_0001>
module attributes {stable_mosaic.version = 11 : i64} {
  func.func @_matmul_stats_kernel(%arg0: i32, %arg1: memref<128x36xf32, #tpu.memory_space<vmem>>, %arg2: memref<36x128xf32, #tpu.memory_space<vmem>>, %arg3: memref<8x128xf32, #tpu.memory_space<vmem>>) attributes {dimension_semantics = [#tpu.dimension_semantics<parallel>], iteration_bounds = array<i64: 1>, scalar_prefetch = 0 : i64, scratch_operands = 0 : i64, tpu.core_type = #tpu.core_type<tc>, window_params = [{transform_indices = @transform_0, window_bounds = array<i64: 128, 36>}, {pipeline_mode = #tpu.pipeline_mode<synchronous>, transform_indices = @transform_1, window_bounds = array<i64: 36, 128>}, {transform_indices = @transform_2, window_bounds = array<i64: 8, 128>}]} {
    %c0 = arith.constant 0 : index
    %c0_0 = arith.constant 0 : index
    %0 = vector.load %arg1[%c0, %c0_0] : memref<128x36xf32, #tpu.memory_space<vmem>>, vector<128x36xf32>
    %c0_1 = arith.constant 0 : index
    %c0_2 = arith.constant 0 : index
    %1 = vector.load %arg2[%c0_1, %c0_2] : memref<36x128xf32, #tpu.memory_space<vmem>>, vector<36x128xf32>
    %cst = arith.constant dense<0.000000e+00> : vector<128x128xf32>
    %2 = tpu.matmul %0, %1, %cst {dimension_numbers = #tpu.dot_dimension_numbers<[1], [0], [0], [1], [0, 0, 1, 1], [], []>} : vector<128x36xf32>, vector<36x128xf32>, vector<128x128xf32> -> vector<128x128xf32>
    %cst_3 = arith.constant dense<0.000000e+00> : vector<128xf32>
    %3 = vector.multi_reduction <add>, %2, %cst_3 [0] : vector<128x128xf32> to vector<128xf32>
    %4 = vector.shape_cast %3 : vector<128xf32> to vector<1x128xf32>
    %5 = arith.mulf %2, %2 : vector<128x128xf32>
    %cst_4 = arith.constant dense<0.000000e+00> : vector<128xf32>
    %6 = vector.multi_reduction <add>, %5, %cst_4 [0] : vector<128x128xf32> to vector<128xf32>
    %7 = vector.shape_cast %6 : vector<128xf32> to vector<1x128xf32>
    %8 = tpu.iota {dimensions = array<i32: 0>} : vector<8x128xi32>
    %9 = vector.shape_cast %4 : vector<1x128xf32> to vector<1x128xf32>
    %10 = vector.broadcast %9 : vector<1x128xf32> to vector<8x128xf32>
    %11 = vector.shape_cast %7 : vector<1x128xf32> to vector<1x128xf32>
    %12 = vector.broadcast %11 : vector<1x128xf32> to vector<8x128xf32>
    %c0_i32 = arith.constant 0 : i32
    %13 = vector.broadcast %c0_i32 : i32 to vector<8x128xi32>
    %14 = arith.cmpi eq, %8, %13 : vector<8x128xi32>
    %c1_i32 = arith.constant 1 : i32
    %15 = vector.broadcast %c1_i32 : i32 to vector<8x128xi32>
    %16 = arith.cmpi eq, %8, %15 : vector<8x128xi32>
    %cst_5 = arith.constant 0.000000e+00 : f32
    %17 = vector.broadcast %cst_5 : f32 to vector<8x128xf32>
    %18 = arith.select %16, %12, %17 : vector<8x128xi1>, vector<8x128xf32>
    %19 = arith.select %14, %10, %18 : vector<8x128xi1>, vector<8x128xf32>
    %c0_6 = arith.constant 0 : index
    %c0_7 = arith.constant 0 : index
    %20 = vector.load %arg3[%c0_6, %c0_7] : memref<8x128xf32, #tpu.memory_space<vmem>>, vector<8x128xf32>
    tpu.vector_store %arg3[%c0_6, %c0_7], %19 {strides = array<i32>} : memref<8x128xf32, #tpu.memory_space<vmem>>, vector<8x128xf32>,
    return
  }
  func.func @transform_0(%arg0: i32) -> (i32, i32) {
    %c0_i32 = arith.constant 0 : i32
    %c0_i32_0 = arith.constant 0 : i32
    return %arg0, %c0_i32 : i32, i32
  }
  func.func @transform_1(%arg0: i32) -> (i32, i32) {
    %c0_i32 = arith.constant 0 : i32
    %c0_i32_0 = arith.constant 0 : i32
    %c0_i32_1 = arith.constant 0 : i32
    return %c0_i32, %c0_i32_0 : i32, i32
  }
  func.func @transform_2(%arg0: i32) -> (i32, i32) {
    %c0_i32 = arith.constant 0 : i32
    %c0_i32_0 = arith.constant 0 : i32
    return %arg0, %c0_i32 : i32, i32
  }
}

module attributes {stable_mosaic.version = 11 : i64} {
  func.func @_matmul_bn_act_kernel(%arg0: i32, %arg1: memref<128x36xf32, #tpu.memory_space<vmem>>, %arg2: memref<36x128xf32, #tpu.memory_space<vmem>>, %arg3: memref<1x128xf32, #tpu.memory_space<vmem>>, %arg4: memref<1x128xf32, #tpu.memory_space<vmem>>, %arg5: memref<1x128xf32, #tpu.memory_space<vmem>>, %arg6: memref<128x128xf32, #tpu.memory_space<vmem>>) attributes {dimension_semantics = [#tpu.dimension_semantics<parallel>], iteration_bounds = array<i64: 1>, scalar_prefetch = 0 : i64, scratch_operands = 0 : i64, tpu.core_type = #tpu.core_type<tc>, window_params = [{transform_indices = @transform_0, window_bounds = array<i64: 128, 36>}, {pipeline_mode = #tpu.pipeline_mode<synchronous>, transform_indices = @transform_1, window_bounds = array<i64: 36, 128>}, {pipeline_mode = #tpu.pipeline_mode<synchronous>, transform_indices = @transform_2, window_bounds = array<i64: 1, 128>}, {pipeline_mode = #tpu.pipeline_mode<synchronous>, transform_indices = @transform_3, window_bounds = array<i64: 1, 128>}, {pipeline_mode = #tpu.pipeline_mode<synchronous>, transform_indices = @transform_4, window_bounds = array<i64: 1, 128>}, {transform_indices = @transform_5, window_bounds = array<i64: 128, 128>}]} {
    %c0 = arith.constant 0 : index
    %c0_0 = arith.constant 0 : index
    %0 = vector.load %arg1[%c0, %c0_0] : memref<128x36xf32, #tpu.memory_space<vmem>>, vector<128x36xf32>
    %c0_1 = arith.constant 0 : index
    %c0_2 = arith.constant 0 : index
    %1 = vector.load %arg2[%c0_1, %c0_2] : memref<36x128xf32, #tpu.memory_space<vmem>>, vector<36x128xf32>
    %cst = arith.constant dense<0.000000e+00> : vector<128x128xf32>
    %2 = tpu.matmul %0, %1, %cst {dimension_numbers = #tpu.dot_dimension_numbers<[1], [0], [0], [1], [0, 0, 1, 1], [], []>} : vector<128x36xf32>, vector<36x128xf32>, vector<128x128xf32> -> vector<128x128xf32>
    %c0_3 = arith.constant 0 : index
    %c0_4 = arith.constant 0 : index
    %3 = vector.load %arg3[%c0_3, %c0_4] : memref<1x128xf32, #tpu.memory_space<vmem>>, vector<1x128xf32>
    %4 = vector.broadcast %3 : vector<1x128xf32> to vector<128x128xf32>
    %5 = arith.mulf %2, %4 : vector<128x128xf32>
    %c0_5 = arith.constant 0 : index
    %c0_6 = arith.constant 0 : index
    %6 = vector.load %arg4[%c0_5, %c0_6] : memref<1x128xf32, #tpu.memory_space<vmem>>, vector<1x128xf32>
    %7 = vector.broadcast %6 : vector<1x128xf32> to vector<128x128xf32>
    %8 = arith.addf %5, %7 : vector<128x128xf32>
    %cst_7 = arith.constant 0.000000e+00 : f32
    %9 = vector.broadcast %cst_7 : f32 to vector<128x128xf32>
    %10 = arith.cmpf oge, %8, %9 : vector<128x128xf32>
    %c0_8 = arith.constant 0 : index
    %c0_9 = arith.constant 0 : index
    %11 = vector.load %arg5[%c0_8, %c0_9] : memref<1x128xf32, #tpu.memory_space<vmem>>, vector<1x128xf32>
    %12 = vector.broadcast %11 : vector<1x128xf32> to vector<128x128xf32>
    %13 = arith.mulf %12, %8 : vector<128x128xf32>
    %14 = arith.select %10, %8, %13 : vector<128x128xi1>, vector<128x128xf32>
    %c0_10 = arith.constant 0 : index
    %c0_11 = arith.constant 0 : index
    %15 = vector.load %arg6[%c0_10, %c0_11] : memref<128x128xf32, #tpu.memory_space<vmem>>, vector<128x128xf32>
    tpu.vector_store %arg6[%c0_10, %c0_11], %14 {strides = array<i32>} : memref<128x128xf32, #tpu.memory_space<vmem>>, vector<128x128xf32>,
    return
  }
  func.func @transform_0(%arg0: i32) -> (i32, i32) {
    %c0_i32 = arith.constant 0 : i32
    %c0_i32_0 = arith.constant 0 : i32
    return %arg0, %c0_i32 : i32, i32
  }
  func.func @transform_1(%arg0: i32) -> (i32, i32) {
    %c0_i32 = arith.constant 0 : i32
    %c0_i32_0 = arith.constant 0 : i32
    %c0_i32_1 = arith.constant 0 : i32
    return %c0_i32, %c0_i32_0 : i32, i32
  }
  func.func @transform_2(%arg0: i32) -> (i32, i32) {
    %c0_i32 = arith.constant 0 : i32
    %c0_i32_0 = arith.constant 0 : i32
    %c0_i32_1 = arith.constant 0 : i32
    return %c0_i32, %c0_i32_0 : i32, i32
  }
  func.func @transform_3(%arg0: i32) -> (i32, i32) {
    %c0_i32 = arith.constant 0 : i32
    %c0_i32_0 = arith.constant 0 : i32
    %c0_i32_1 = arith.constant 0 : i32
    return %c0_i32, %c0_i32_0 : i32, i32
  }
  func.func @transform_4(%arg0: i32) -> (i32, i32) {
    %c0_i32 = arith.constant 0 : i32
    %c0_i32_0 = arith.constant 0 : i32
    %c0_i32_1 = arith.constant 0 : i32
    return %c0_i32, %c0_i32_0 : i32, i32
  }
  func.func @transform_5(%arg0: i32) -> (i32, i32) {
    %c0_i32 = arith.constant 0 : i32
    %c0_i32_0 = arith.constant 0 : i32
    return %arg0, %c0_i32 : i32, i32
  }
}

module attributes {stable_mosaic.version = 11 : i64} {
  func.func @_matmul_bn_act_res_kernel(%arg0: i32, %arg1: memref<128x36xf32, #tpu.memory_space<vmem>>, %arg2: memref<36x128xf32, #tpu.memory_space<vmem>>, %arg3: memref<1x128xf32, #tpu.memory_space<vmem>>, %arg4: memref<1x128xf32, #tpu.memory_space<vmem>>, %arg5: memref<1x128xf32, #tpu.memory_space<vmem>>, %arg6: memref<128x128xf32, #tpu.memory_space<vmem>>, %arg7: memref<128x128xf32, #tpu.memory_space<vmem>>) attributes {dimension_semantics = [#tpu.dimension_semantics<parallel>], iteration_bounds = array<i64: 1>, scalar_prefetch = 0 : i64, scratch_operands = 0 : i64, tpu.core_type = #tpu.core_type<tc>, window_params = [{transform_indices = @transform_0, window_bounds = array<i64: 128, 36>}, {pipeline_mode = #tpu.pipeline_mode<synchronous>, transform_indices = @transform_1, window_bounds = array<i64: 36, 128>}, {pipeline_mode = #tpu.pipeline_mode<synchronous>, transform_indices = @transform_2, window_bounds = array<i64: 1, 128>}, {pipeline_mode = #tpu.pipeline_mode<synchronous>, transform_indices = @transform_3, window_bounds = array<i64: 1, 128>}, {pipeline_mode = #tpu.pipeline_mode<synchronous>, transform_indices = @transform_4, window_bounds = array<i64: 1, 128>}, {transform_indices = @transform_5, window_bounds = array<i64: 128, 128>}, {transform_indices = @transform_6, window_bounds = array<i64: 128, 128>}]} {
    %c0 = arith.constant 0 : index
    %c0_0 = arith.constant 0 : index
    %0 = vector.load %arg1[%c0, %c0_0] : memref<128x36xf32, #tpu.memory_space<vmem>>, vector<128x36xf32>
    %c0_1 = arith.constant 0 : index
    %c0_2 = arith.constant 0 : index
    %1 = vector.load %arg2[%c0_1, %c0_2] : memref<36x128xf32, #tpu.memory_space<vmem>>, vector<36x128xf32>
    %cst = arith.constant dense<0.000000e+00> : vector<128x128xf32>
    %2 = tpu.matmul %0, %1, %cst {dimension_numbers = #tpu.dot_dimension_numbers<[1], [0], [0], [1], [0, 0, 1, 1], [], []>} : vector<128x36xf32>, vector<36x128xf32>, vector<128x128xf32> -> vector<128x128xf32>
    %c0_3 = arith.constant 0 : index
    %c0_4 = arith.constant 0 : index
    %3 = vector.load %arg3[%c0_3, %c0_4] : memref<1x128xf32, #tpu.memory_space<vmem>>, vector<1x128xf32>
    %4 = vector.broadcast %3 : vector<1x128xf32> to vector<128x128xf32>
    %5 = arith.mulf %2, %4 : vector<128x128xf32>
    %c0_5 = arith.constant 0 : index
    %c0_6 = arith.constant 0 : index
    %6 = vector.load %arg4[%c0_5, %c0_6] : memref<1x128xf32, #tpu.memory_space<vmem>>, vector<1x128xf32>
    %7 = vector.broadcast %6 : vector<1x128xf32> to vector<128x128xf32>
    %8 = arith.addf %5, %7 : vector<128x128xf32>
    %cst_7 = arith.constant 0.000000e+00 : f32
    %9 = vector.broadcast %cst_7 : f32 to vector<128x128xf32>
    %10 = arith.cmpf oge, %8, %9 : vector<128x128xf32>
    %c0_8 = arith.constant 0 : index
    %c0_9 = arith.constant 0 : index
    %11 = vector.load %arg5[%c0_8, %c0_9] : memref<1x128xf32, #tpu.memory_space<vmem>>, vector<1x128xf32>
    %12 = vector.broadcast %11 : vector<1x128xf32> to vector<128x128xf32>
    %13 = arith.mulf %12, %8 : vector<128x128xf32>
    %14 = arith.select %10, %8, %13 : vector<128x128xi1>, vector<128x128xf32>
    %c0_10 = arith.constant 0 : index
    %c0_11 = arith.constant 0 : index
    %15 = vector.load %arg6[%c0_10, %c0_11] : memref<128x128xf32, #tpu.memory_space<vmem>>, vector<128x128xf32>
    %16 = arith.addf %14, %15 : vector<128x128xf32>
    %c0_12 = arith.constant 0 : index
    %c0_13 = arith.constant 0 : index
    %17 = vector.load %arg7[%c0_12, %c0_13] : memref<128x128xf32, #tpu.memory_space<vmem>>, vector<128x128xf32>
    tpu.vector_store %arg7[%c0_12, %c0_13], %16 {strides = array<i32>} : memref<128x128xf32, #tpu.memory_space<vmem>>, vector<128x128xf32>,
    return
  }
  func.func @transform_0(%arg0: i32) -> (i32, i32) {
    %c0_i32 = arith.constant 0 : i32
    %c0_i32_0 = arith.constant 0 : i32
    return %arg0, %c0_i32 : i32, i32
  }
  func.func @transform_1(%arg0: i32) -> (i32, i32) {
    %c0_i32 = arith.constant 0 : i32
    %c0_i32_0 = arith.constant 0 : i32
    %c0_i32_1 = arith.constant 0 : i32
    return %c0_i32, %c0_i32_0 : i32, i32
  }
  func.func @transform_2(%arg0: i32) -> (i32, i32) {
    %c0_i32 = arith.constant 0 : i32
    %c0_i32_0 = arith.constant 0 : i32
    %c0_i32_1 = arith.constant 0 : i32
    return %c0_i32, %c0_i32_0 : i32, i32
  }
  func.func @transform_3(%arg0: i32) -> (i32, i32) {
    %c0_i32 = arith.constant 0 : i32
    %c0_i32_0 = arith.constant 0 : i32
    %c0_i32_1 = arith.constant 0 : i32
    return %c0_i32, %c0_i32_0 : i32, i32
  }
  func.func @transform_4(%arg0: i32) -> (i32, i32) {
    %c0_i32 = arith.constant 0 : i32
    %c0_i32_0 = arith.constant 0 : i32
    %c0_i32_1 = arith.constant 0 : i32
    return %c0_i32, %c0_i32_0 : i32, i32
  }
  func.func @transform_5(%arg0: i32) -> (i32, i32) {
    %c0_i32 = arith.constant 0 : i32
    %c0_i32_0 = arith.constant 0 : i32
    return %arg0, %c0_i32 : i32, i32
  }
  func.func @transform_6(%arg0: i32) -> (i32, i32) {
    %c0_i32 = arith.constant 0 : i32
    %c0_i32_0 = arith.constant 0 : i32
    return %arg0, %c0_i32 : i32, i32
  }
}

</mosaic_0001>

<bundles_post_ra>
// kernel: res_block_down.4
= control target key start
LH: loop header
LB: loop body
LE: loop exit
PB: predicated region body
PF: predicated region fallthrough
CT: control target
= control target key end

     0   :  { %vm32_vm0 = vcmask 293888   ;;  %vm81_vm1 = vcmask 1043456   ;;  %s482_s1 = inlined_call_operand.vmem [shape: f32[36,128], index: 1, kind: input, shape index: {}]   ;;  %s483_s0 = inlined_call_operand.vmem [shape: f32[128,36], index: 0, kind: input, shape index: {}]   ;;  %s484_s2 = inlined_call_operand.vmem [shape: f32[8,128], index: 2, kind: output, shape index: {}]  }
   0x1   :  { %v27_v0 = vld [vmem:[%s482_s1] sm:$0xff]  ;;  %v28_v1 = vld [vmem:[%s482_s1 + $0x8] sm:$0xff]  ;;  %v29_v2 = vld [vmem:[%s482_s1 + $0x10] sm:$0xff] }
   0x2   :  { %v371_v3 = vpack.c.bf16 %v28_v1, %v27_v0  ;;  %v30_v4 = vld [vmem:[%s482_s1 + $0x18] sm:$0xff]  ;;  %v11_v5 = vld [vmem:[%s483_s0] sm:$0xff]  ;;  %v12_v9 = vld [vmem:[%s483_s0 + $0x8] sm:$0xff] }
   0x3   :  { %v375_v6 = vpack.c.bf16 %v30_v4, %v29_v2  ;;  %347 = vmatprep.mubr.msk.f32.mxu0 %vm32_vm0, %v11_v5  ;;  %v19_v7 = vld [vmem:[%s483_s0 + $0x40] sm:$0xff]  ;;  %v20_v10 = vld [vmem:[%s483_s0 + $0x48] sm:$0xff]  ;;  %v13_v11 = vld [vmem:[%s483_s0 + $0x10] sm:$0xff] }
   0x4   :  { %372 = vmatprep.subr.bf16.mxu0 %v371_v3  ;;  %379 = vmatprep.subr.bf16.mxu1 %v371_v3  ;;  %v31_v8 = vld [vmem:[%s482_s1 + $0x20] sm:$0xf]  ;;  %v21_v12 = vld [vmem:[%s483_s0 + $0x50] sm:$0xff]  ;;  %v14_v13 = vld [vmem:[%s483_s0 + $0x18] sm:$0xff] }
   0x5   :  { %374 = vmatpush3.bf16.msra.mxu0 %v371_v3  ;;  %382 = vmatpush3.bf16.msra.mxu1 %v371_v3  ;;  %v22_v14 = vld [vmem:[%s483_s0 + $0x58] sm:$0xff]  ;;  %v15_v15 = vld [vmem:[%s483_s0 + $0x20] sm:$0xff]  ;;  %v16_v17 = vld [vmem:[%s483_s0 + $0x28] sm:$0xff] }
   0x6   :  { %376 = vmatprep.subr.bf16.mxu0 %v375_v6  ;;  %380 = vmatprep.subr.bf16.mxu1 %v375_v6  ;;  %v23_v16 = vld [vmem:[%s483_s0 + $0x60] sm:$0xff]  ;;  %v24_v18 = vld [vmem:[%s483_s0 + $0x68] sm:$0xff]  ;;  %v17_v19 = vld [vmem:[%s483_s0 + $0x30] sm:$0xff] }
   0x7   :  { %359 = vmatprep.mubr.msk.f32.mxu1 %vm32_vm0, %v19_v7  ;;  %v25_v20 = vld [vmem:[%s483_s0 + $0x70] sm:$0xff]  ;;  %v18_v21 = vld [vmem:[%s483_s0 + $0x38] sm:$0xff] }
   0x8   :  { %v26_v22 = vld [vmem:[%s483_s0 + $0x78] sm:$0xff] }
   0x9   :  { %378 = vmatpush3.bf16.msra.mxu0 %v375_v6  ;;  %383 = vmatpush3.bf16.msra.mxu1 %v375_v6 }
   0xa   :  { %345 = vmatprep.subr.msk.mxu0 %vm81_vm1, %v31_v8  ;;  %381 = vmatprep.subr.msk.mxu1 %vm81_vm1, %v31_v8 }
   0xd   :  { %346 = vmatpush3.msk.msra.mxu0 %vm81_vm1, %v31_v8  ;;  %384 = vmatpush3.msk.msra.mxu1 %vm81_vm1, %v31_v8 }
   0xe   :  { %348 = vmatmul.mubr.msk.f32.vlgmr.msra.gmra.mrb[0].mxu0 %vm32_vm0, %v12_v9  ;;  %360 = vmatmul.mubr.msk.f32.vlgmr.msra.gmra.mrb[0].mxu1 %vm32_vm0, %v20_v10 }
   0xf   :  { %350 = vmatprep.mubr.msk.f32.mxu0 %vm32_vm0, %v13_v11  ;;  %362 = vmatprep.mubr.msk.f32.mxu1 %vm32_vm0, %v21_v12 }
  0x12   :  { %351 = vmatmul.mubr.msk.f32.gmra.mrb[2].mxu0 %vm32_vm0, %v14_v13  ;;  %363 = vmatmul.mubr.msk.f32.gmra.mrb[2].mxu1 %vm32_vm0, %v22_v14 }
  0x13   :  { %353 = vmatprep.mubr.msk.f32.mxu0 %vm32_vm0, %v15_v15  ;;  %365 = vmatprep.mubr.msk.f32.mxu1 %vm32_vm0, %v23_v16 }
  0x16   :  { %354 = vmatmul.mubr.msk.f32.gmra.mrb[4].mxu0 %vm32_vm0, %v16_v17  ;;  %366 = vmatmul.mubr.msk.f32.gmra.mrb[4].mxu1 %vm32_vm0, %v24_v18 }
  0x17   :  { %356 = vmatprep.mubr.msk.f32.mxu0 %vm32_vm0, %v17_v19  ;;  %368 = vmatprep.mubr.msk.f32.mxu1 %vm32_vm0, %v25_v20 }
  0x1a   :  { %357 = vmatmul.mubr.msk.f32.gmra.mrb[6].mxu0 %vm32_vm0, %v18_v21  ;;  %369 = vmatmul.mubr.msk.f32.gmra.mrb[6].mxu1 %vm32_vm0, %v26_v22 }
  0xe1   :  { %v349_v23 = vpop.f32.mrb[0].mxu0  ;;  %v361_v24 = vpop.f32.mrb[0].mxu1 }
  0xe2   :  { %v252_v25 = vmul.f32 %v349_v23, %v349_v23  ;;  %v151_v26 = vpop.f32.mrb[1].mxu0  ;;  %v191_v27 = vpop.f32.mrb[1].mxu1  ;;  %v260_v63 = vmul.f32 %v361_v24, %v361_v24 }
  0xe3   :  { %v230_v28 = vadd.f32 %v349_v23, %v151_v26  ;;  %v251_v29 = vmul.f32 %v151_v26, %v151_v26  ;;  %v259_v60 = vmul.f32 %v191_v27, %v191_v27 }
  0xe5   :  { %v267_v30 = vadd.f32 %v252_v25, %v251_v29  ;;  %v352_v31 = vpop.f32.mrb[2].mxu0  ;;  %v364_v32 = vpop.f32.mrb[2].mxu1 }
  0xe6   :  { %v161_v33 = vpop.f32.mrb[3].mxu0  ;;  %v201_v34 = vpop.f32.mrb[3].mxu1  ;;  %v254_v37 = vmul.f32 %v352_v31, %v352_v31  ;;  %v262_v5 = vmul.f32 %v364_v32, %v364_v32 }
  0xe7   :  { %v231_v35 = vadd.f32 %v230_v28, %v161_v33  ;;  %v253_v36 = vmul.f32 %v161_v33, %v161_v33  ;;  %v261_v2 = vmul.f32 %v201_v34, %v201_v34 }
  0xe9   :  { %v268_v38 = vadd.f32 %v267_v30, %v253_v36  ;;  %v355_v39 = vpop.f32.mrb[4].mxu0  ;;  %v232_v40 = vadd.f32 %v352_v31, %v231_v35  ;;  %v367_v41 = vpop.f32.mrb[4].mxu1 }
  0xea   :  { %v171_v42 = vpop.f32.mrb[5].mxu0  ;;  %v211_v43 = vpop.f32.mrb[5].mxu1  ;;  %v256_v47 = vmul.f32 %v355_v39, %v355_v39  ;;  %v264_v11 = vmul.f32 %v367_v41, %v367_v41 }
  0xeb   :  { %v233_v44 = vadd.f32 %v232_v40, %v171_v42  ;;  %v255_v45 = vmul.f32 %v171_v42, %v171_v42  ;;  %v269_v46 = vadd.f32 %v268_v38, %v254_v37  ;;  %v263_v8 = vmul.f32 %v211_v43, %v211_v43 }
  0xed   :  { %v270_v48 = vadd.f32 %v269_v46, %v255_v45  ;;  %v358_v49 = vpop.f32.mrb[6].mxu0  ;;  %v234_v50 = vadd.f32 %v355_v39, %v233_v44  ;;  %v370_v51 = vpop.f32.mrb[6].mxu1 }
  0xee   :  { %v181_v52 = vpop.f32.mrb[7].mxu0  ;;  %v221_v53 = vpop.f32.mrb[7].mxu1  ;;  %v258_v57 = vmul.f32 %v358_v49, %v358_v49  ;;  %v266_v17 = vmul.f32 %v370_v51, %v370_v51 }
  0xef   :  { %v235_v54 = vadd.f32 %v234_v50, %v181_v52  ;;  %v257_v55 = vmul.f32 %v181_v52, %v181_v52  ;;  %v271_v56 = vadd.f32 %v270_v48, %v256_v47  ;;  %v265_v14 = vmul.f32 %v221_v53, %v221_v53 }
  0xf1   :  { %v236_v58 = vadd.f32 %v358_v49, %v235_v54  ;;  %v272_v59 = vadd.f32 %v271_v56, %v257_v55 }
  0xf3   :  { %v273_v61 = vadd.f32 %v272_v59, %v258_v57  ;;  %v237_v62 = vadd.f32 %v236_v58, %v191_v27 }
  0xf5   :  { %v274_v0 = vadd.f32 %v273_v61, %v259_v60  ;;  %v238_v1 = vadd.f32 %v361_v24, %v237_v62  ;;  %v288_v24 = vlaneseq }
  0xf7   :  { %v239_v3 = vadd.f32 %v238_v1, %v201_v34  ;;  %v275_v4 = vadd.f32 %v274_v0, %v260_v63  ;;  %v289_v29 = vshrl.u32 %v288_v24, 7 }
  0xf9   :  { %v276_v6 = vadd.f32 %v275_v4, %v261_v2  ;;  %v240_v7 = vadd.f32 %v364_v32, %v239_v3  ;;  %vm291_vm2 = vcmp.eq.s32.totalorder %v289_v29, 1  ;;  %vm290_vm3 = vcmp.eq.s32.totalorder %v289_v29, 0 }
  0xfb   :  { %v241_v9 = vadd.f32 %v240_v7, %v211_v43  ;;  %v277_v10 = vadd.f32 %v276_v6, %v262_v5 }
  0xfd   :  { %v278_v12 = vadd.f32 %v277_v10, %v263_v8  ;;  %v242_v13 = vadd.f32 %v367_v41, %v241_v9 }
  0xff   :  { %v243_v15 = vadd.f32 %v242_v13, %v221_v53  ;;  %v279_v16 = vadd.f32 %v278_v12, %v264_v11 }
 0x101   :  { %v244_v18 = vadd.f32 %v370_v51, %v243_v15  ;;  %v280_v19 = vadd.f32 %v279_v16, %v265_v14 }
 0x103   :  { %v245_v20 = vrot.slane %v244_v18, 4  ;;  %v281_v21 = vadd.f32 %v280_v19, %v266_v17 }
 0x105   :  { %v246_v22 = vadd.f32 %v245_v20, %v244_v18  ;;  %v282_v23 = vrot.slane %v281_v21, 4 }
 0x107   :  { %v247_v25 = vrot.slane %v246_v22, 2  ;;  %v283_v26 = vadd.f32 %v282_v23, %v281_v21 }
 0x109   :  { %v248_v27 = vadd.f32 %v247_v25, %v246_v22  ;;  %v284_v28 = vrot.slane %v283_v26, 2 }
 0x10b   :  { %v285_v30 = vadd.f32 %v284_v28, %v283_v26  ;;  %v249_v31 = vrot.slane %v248_v27, 1 }
 0x10d   :  { %v286_v32 = vrot.slane %v285_v30, 1  ;;  %v250_v34 = vadd.f32 %v249_v31, %v248_v27 }
 0x10f   :  { %v287_v33 = vadd.f32 %v286_v32, %v285_v30 }
 0x111   :  { %v292_v35 = vsel %vm291_vm2, %v287_v33, 0.0 }
 0x112   :  { %v293_v36 = vsel %vm290_vm3, %v250_v34, %v292_v35 }
 0x113   :  { %294 = vst [vmem:[%s484_s2] sm:$0xff] %v293_v36 }

// kernel: res_block_down.5
= control target key start
LH: loop header
LB: loop body
LE: loop exit
PB: predicated region body
PF: predicated region fallthrough
CT: control target
= control target key end

     0   :  { %vm41_vm0 = vcmask 293888   ;;  %vm90_vm1 = vcmask 1043456   ;;  %s669_s1 = inlined_call_operand.vmem [shape: f32[36,128], index: 1, kind: input, shape index: {}]   ;;  %s670_s0 = inlined_call_operand.vmem [shape: f32[128,36], index: 0, kind: input, shape index: {}]   ;;  %s671_s2 = inlined_call_operand.vmem [shape: f32[1,128], index: 2, kind: input, shape index: {}]   ;;  %s672_s3 = inlined_call_operand.vmem [shape: f32[1,128], index: 3, kind: input, shape index: {}]   ;;  %s673_s4 = inlined_call_operand.vmem [shape: f32[1,128], index: 4, kind: input, shape index: {}]   ;;  %s674_s5 = inlined_call_operand.vmem [shape: f32[128,128], index: 5, kind: output, shape index: {}]  }
   0x1   :  { %v36_v0 = vld [vmem:[%s669_s1] sm:$0xff]  ;;  %v37_v1 = vld [vmem:[%s669_s1 + $0x8] sm:$0xff]  ;;  %v38_v2 = vld [vmem:[%s669_s1 + $0x10] sm:$0xff] }
   0x2   :  { %v435_v3 = vpack.c.bf16 %v37_v1, %v36_v0  ;;  %v39_v4 = vld [vmem:[%s669_s1 + $0x18] sm:$0xff]  ;;  %v20_v5 = vld [vmem:[%s670_s0] sm:$0xff]  ;;  %v21_v9 = vld [vmem:[%s670_s0 + $0x8] sm:$0xff] }
   0x3   :  { %v439_v6 = vpack.c.bf16 %v39_v4, %v38_v2  ;;  %411 = vmatprep.mubr.msk.f32.mxu0 %vm41_vm0, %v20_v5  ;;  %v28_v7 = vld [vmem:[%s670_s0 + $0x40] sm:$0xff]  ;;  %v29_v10 = vld [vmem:[%s670_s0 + $0x48] sm:$0xff]  ;;  %v22_v11 = vld [vmem:[%s670_s0 + $0x10] sm:$0xff] }
   0x4   :  { %436 = vmatprep.subr.bf16.mxu0 %v435_v3  ;;  %443 = vmatprep.subr.bf16.mxu1 %v435_v3  ;;  %v40_v8 = vld [vmem:[%s669_s1 + $0x20] sm:$0xf]  ;;  %v30_v12 = vld [vmem:[%s670_s0 + $0x50] sm:$0xff]  ;;  %v23_v13 = vld [vmem:[%s670_s0 + $0x18] sm:$0xff] }
   0x5   :  { %438 = vmatpush3.bf16.msra.mxu0 %v435_v3  ;;  %446 = vmatpush3.bf16.msra.mxu1 %v435_v3  ;;  %v31_v14 = vld [vmem:[%s670_s0 + $0x58] sm:$0xff]  ;;  %v24_v15 = vld [vmem:[%s670_s0 + $0x20] sm:$0xff]  ;;  %v25_v17 = vld [vmem:[%s670_s0 + $0x28] sm:$0xff] }
   0x6   :  { %440 = vmatprep.subr.bf16.mxu0 %v439_v6  ;;  %444 = vmatprep.subr.bf16.mxu1 %v439_v6  ;;  %v32_v16 = vld [vmem:[%s670_s0 + $0x60] sm:$0xff]  ;;  %v33_v18 = vld [vmem:[%s670_s0 + $0x68] sm:$0xff]  ;;  %v26_v19 = vld [vmem:[%s670_s0 + $0x30] sm:$0xff] }
   0x7   :  { %423 = vmatprep.mubr.msk.f32.mxu1 %vm41_vm0, %v28_v7  ;;  %v34_v20 = vld [vmem:[%s670_s0 + $0x70] sm:$0xff]  ;;  %v27_v21 = vld [vmem:[%s670_s0 + $0x38] sm:$0xff]  ;;  %v561_v23 = vld [vmem:[%s671_s2] ss:$0 sm:$0xff] }
   0x8   :  { %v35_v22 = vld [vmem:[%s670_s0 + $0x78] sm:$0xff]  ;;  %v566_v25 = vld [vmem:[%s672_s3] ss:$0 sm:$0xff] }
   0x9   :  { %442 = vmatpush3.bf16.msra.mxu0 %v439_v6  ;;  %447 = vmatpush3.bf16.msra.mxu1 %v439_v6  ;;  %v573_v31 = vld [vmem:[%s673_s4] ss:$0 sm:$0xff] }
   0xa   :  { %409 = vmatprep.subr.msk.mxu0 %vm90_vm1, %v40_v8  ;;  %445 = vmatprep.subr.msk.mxu1 %vm90_vm1, %v40_v8 }
   0xd   :  { %410 = vmatpush3.msk.msra.mxu0 %vm90_vm1, %v40_v8  ;;  %448 = vmatpush3.msk.msra.mxu1 %vm90_vm1, %v40_v8 }
   0xe   :  { %412 = vmatmul.mubr.msk.f32.vlgmr.msra.gmra.mrb[0].mxu0 %vm41_vm0, %v21_v9  ;;  %424 = vmatmul.mubr.msk.f32.vlgmr.msra.gmra.mrb[0].mxu1 %vm41_vm0, %v29_v10 }
   0xf   :  { %414 = vmatprep.mubr.msk.f32.mxu0 %vm41_vm0, %v22_v11  ;;  %426 = vmatprep.mubr.msk.f32.mxu1 %vm41_vm0, %v30_v12 }
  0x12   :  { %415 = vmatmul.mubr.msk.f32.gmra.mrb[2].mxu0 %vm41_vm0, %v23_v13  ;;  %427 = vmatmul.mubr.msk.f32.gmra.mrb[2].mxu1 %vm41_vm0, %v31_v14 }
  0x13   :  { %417 = vmatprep.mubr.msk.f32.mxu0 %vm41_vm0, %v24_v15  ;;  %429 = vmatprep.mubr.msk.f32.mxu1 %vm41_vm0, %v32_v16 }
  0x16   :  { %418 = vmatmul.mubr.msk.f32.gmra.mrb[4].mxu0 %vm41_vm0, %v25_v17  ;;  %430 = vmatmul.mubr.msk.f32.gmra.mrb[4].mxu1 %vm41_vm0, %v33_v18 }
  0x17   :  { %420 = vmatprep.mubr.msk.f32.mxu0 %vm41_vm0, %v26_v19  ;;  %432 = vmatprep.mubr.msk.f32.mxu1 %vm41_vm0, %v34_v20 }
  0x1a   :  { %421 = vmatmul.mubr.msk.f32.gmra.mrb[6].mxu0 %vm41_vm0, %v27_v21  ;;  %433 = vmatmul.mubr.msk.f32.gmra.mrb[6].mxu1 %vm41_vm0, %v35_v22 }
  0xe1   :  { %v413_v24 = vpop.f32.mrb[0].mxu0  ;;  %v425_v26 = vpop.f32.mrb[0].mxu1 }
  0xe2   :  { %v247_v27 = vmul.f32 %v413_v24, %v561_v23  ;;  %v255_v28 = vmul.f32 %v425_v26, %v561_v23  ;;  %v160_v29 = vpop.f32.mrb[1].mxu0  ;;  %v200_v30 = vpop.f32.mrb[1].mxu1 }
  0xe3   :  { %v246_v32 = vmul.f32 %v561_v23, %v160_v29  ;;  %v254_v33 = vmul.f32 %v561_v23, %v200_v30 }
  0xe4   :  { %v270_v34 = vadd.f32 %v566_v25, %v247_v27  ;;  %v278_v35 = vadd.f32 %v566_v25, %v255_v28 }
  0xe5   :  { %v269_v36 = vadd.f32 %v566_v25, %v246_v32  ;;  %v277_v37 = vadd.f32 %v566_v25, %v254_v33  ;;  %v416_v38 = vpop.f32.mrb[2].mxu0  ;;  %v428_v39 = vpop.f32.mrb[2].mxu1 }
  0xe6   :  { %vm286_vm2 = vcmp.ge.f32.partialorder %v270_v34, 0.0  ;;  %v309_v40 = vmul.f32 %v573_v31, %v270_v34  ;;  %vm294_vm3 = vcmp.ge.f32.partialorder %v278_v35, 0.0  ;;  %v317_v41 = vmul.f32 %v573_v31, %v278_v35  ;;  %v170_v42 = vpop.f32.mrb[3].mxu0  ;;  %v210_v43 = vpop.f32.mrb[3].mxu1 }
  0xe7   :  { %vm285_vm4 = vcmp.ge.f32.partialorder %v269_v36, 0.0  ;;  %v308_v44 = vmul.f32 %v573_v31, %v269_v36  ;;  %vm293_vm5 = vcmp.ge.f32.partialorder %v277_v37, 0.0  ;;  %v316_v45 = vmul.f32 %v573_v31, %v277_v37 }
  0xe8   :  { %v325_v46 = vsel %vm286_vm2, %v270_v34, %v309_v40  ;;  %v333_v47 = vsel %vm294_vm3, %v278_v35, %v317_v41  ;;  %v249_v48 = vmul.f32 %v416_v38, %v561_v23  ;;  %v257_v49 = vmul.f32 %v428_v39, %v561_v23 }
  0xe9   :  { %341 = vst [vmem:[%s674_s5 + $0x8] sm:$0xff] %v325_v46  ;;  %349 = vst [vmem:[%s674_s5 + $0x48] sm:$0xff] %v333_v47  ;;  %v324_v50 = vsel %vm285_vm4, %v269_v36, %v308_v44  ;;  %v332_v51 = vsel %vm293_vm5, %v277_v37, %v316_v45  ;;  %v248_v52 = vmul.f32 %v561_v23, %v170_v42  ;;  %v419_v54 = vpop.f32.mrb[4].mxu0  ;;  %v431_v55 = vpop.f32.mrb[4].mxu1 }
  0xea   :  { %v256_v53 = vmul.f32 %v561_v23, %v210_v43  ;;  %340 = vst [vmem:[%s674_s5] sm:$0xff] %v324_v50  ;;  %348 = vst [vmem:[%s674_s5 + $0x40] sm:$0xff] %v332_v51  ;;  %v272_v56 = vadd.f32 %v566_v25, %v249_v48  ;;  %v280_v57 = vadd.f32 %v566_v25, %v257_v49  ;;  %v180_v60 = vpop.f32.mrb[5].mxu0  ;;  %v220_v61 = vpop.f32.mrb[5].mxu1 }
  0xeb   :  { %v251_v58 = vmul.f32 %v419_v54, %v561_v23  ;;  %v259_v59 = vmul.f32 %v431_v55, %v561_v23  ;;  %v271_v62 = vadd.f32 %v566_v25, %v248_v52  ;;  %v250_v0 = vmul.f32 %v561_v23, %v180_v60 }
  0xec   :  { %v279_v63 = vadd.f32 %v566_v25, %v256_v53  ;;  %v258_v1 = vmul.f32 %v561_v23, %v220_v61  ;;  %vm288_vm6 = vcmp.ge.f32.partialorder %v272_v56, 0.0  ;;  %v311_v2 = vmul.f32 %v573_v31, %v272_v56 }
  0xed   :  { %vm296_vm7 = vcmp.ge.f32.partialorder %v280_v57, 0.0  ;;  %v319_v3 = vmul.f32 %v573_v31, %v280_v57  ;;  %vm287_vm8 = vcmp.ge.f32.partialorder %v271_v62, 0.0  ;;  %v310_v4 = vmul.f32 %v573_v31, %v271_v62  ;;  %v422_v6 = vpop.f32.mrb[6].mxu0  ;;  %v434_v7 = vpop.f32.mrb[6].mxu1 }
  0xee   :  { %vm295_vm9 = vcmp.ge.f32.partialorder %v279_v63, 0.0  ;;  %v318_v5 = vmul.f32 %v573_v31, %v279_v63  ;;  %v327_v8 = vsel %vm288_vm6, %v272_v56, %v311_v2  ;;  %v274_v10 = vadd.f32 %v566_v25, %v251_v58  ;;  %v190_v12 = vpop.f32.mrb[7].mxu0  ;;  %v230_v13 = vpop.f32.mrb[7].mxu1 }
  0xef   :  { %v335_v9 = vsel %vm296_vm7, %v280_v57, %v319_v3  ;;  %v282_v11 = vadd.f32 %v566_v25, %v259_v59  ;;  %343 = vst [vmem:[%s674_s5 + $0x18] sm:$0xff] %v327_v8  ;;  %v326_v14 = vsel %vm287_vm8, %v271_v62, %v310_v4  ;;  %v273_v16 = vadd.f32 %v566_v25, %v250_v0 }
  0xf0   :  { %351 = vst [vmem:[%s674_s5 + $0x58] sm:$0xff] %v335_v9  ;;  %v334_v15 = vsel %vm295_vm9, %v279_v63, %v318_v5  ;;  %v281_v17 = vadd.f32 %v566_v25, %v258_v1  ;;  %342 = vst [vmem:[%s674_s5 + $0x10] sm:$0xff] %v326_v14  ;;  %vm290_vm10 = vcmp.ge.f32.partialorder %v274_v10, 0.0  ;;  %v313_v18 = vmul.f32 %v573_v31, %v274_v10 }
  0xf1   :  { %350 = vst [vmem:[%s674_s5 + $0x50] sm:$0xff] %v334_v15  ;;  %vm298_vm11 = vcmp.ge.f32.partialorder %v282_v11, 0.0  ;;  %v321_v19 = vmul.f32 %v573_v31, %v282_v11  ;;  %vm289_vm12 = vcmp.ge.f32.partialorder %v273_v16, 0.0  ;;  %v312_v20 = vmul.f32 %v573_v31, %v273_v16 }
  0xf2   :  { %vm297_vm13 = vcmp.ge.f32.partialorder %v281_v17, 0.0  ;;  %v320_v21 = vmul.f32 %v573_v31, %v281_v17  ;;  %v329_v22 = vsel %vm290_vm10, %v274_v10, %v313_v18  ;;  %v253_v26 = vmul.f32 %v422_v6, %v561_v23 }
  0xf3   :  { %v337_v24 = vsel %vm298_vm11, %v282_v11, %v321_v19  ;;  %v261_v27 = vmul.f32 %v434_v7, %v561_v23  ;;  %345 = vst [vmem:[%s674_s5 + $0x28] sm:$0xff] %v329_v22  ;;  %v328_v28 = vsel %vm289_vm12, %v273_v16, %v312_v20  ;;  %v252_v30 = vmul.f32 %v561_v23, %v190_v12 }
  0xf4   :  { %353 = vst [vmem:[%s674_s5 + $0x68] sm:$0xff] %v337_v24  ;;  %v336_v29 = vsel %vm297_vm13, %v281_v17, %v320_v21  ;;  %v260_v32 = vmul.f32 %v561_v23, %v230_v13  ;;  %344 = vst [vmem:[%s674_s5 + $0x20] sm:$0xff] %v328_v28  ;;  %v276_v33 = vadd.f32 %v566_v25, %v253_v26 }
  0xf5   :  { %352 = vst [vmem:[%s674_s5 + $0x60] sm:$0xff] %v336_v29  ;;  %v284_v34 = vadd.f32 %v566_v25, %v261_v27  ;;  %v275_v35 = vadd.f32 %v566_v25, %v252_v30 }
  0xf6   :  { %v283_v36 = vadd.f32 %v566_v25, %v260_v32  ;;  %vm292_vm14 = vcmp.ge.f32.partialorder %v276_v33, 0.0  ;;  %v315_v37 = vmul.f32 %v573_v31, %v276_v33 }
  0xf7   :  { %vm300_vm15 = vcmp.ge.f32.partialorder %v284_v34, 0.0  ;;  %v323_v23 = vmul.f32 %v573_v31, %v284_v34  ;;  %vm291_vm0 = vcmp.ge.f32.partialorder %v275_v35, 0.0  ;;  %v314_v38 = vmul.f32 %v573_v31, %v275_v35 }
  0xf8   :  { %vm299_vm1 = vcmp.ge.f32.partialorder %v283_v36, 0.0  ;;  %v322_v39 = vmul.f32 %v573_v31, %v283_v36  ;;  %v331_v40 = vsel %vm292_vm14, %v276_v33, %v315_v37 }
  0xf9   :  { %v339_v41 = vsel %vm300_vm15, %v284_v34, %v323_v23  ;;  %347 = vst [vmem:[%s674_s5 + $0x38] sm:$0xff] %v331_v40  ;;  %v330_v25 = vsel %vm291_vm0, %v275_v35, %v314_v38 }
  0xfa   :  { %355 = vst [vmem:[%s674_s5 + $0x78] sm:$0xff] %v339_v41  ;;  %v338_v42 = vsel %vm299_vm1, %v283_v36, %v322_v39  ;;  %346 = vst [vmem:[%s674_s5 + $0x30] sm:$0xff] %v330_v25 }
  0xfb   :  { %354 = vst [vmem:[%s674_s5 + $0x70] sm:$0xff] %v338_v42 }

// kernel: res_block_down.7
= control target key start
LH: loop header
LB: loop body
LE: loop exit
PB: predicated region body
PF: predicated region fallthrough
CT: control target
= control target key end

     0   :  { %vm44_vm0 = vcmask 293888   ;;  %vm93_vm1 = vcmask 1043456   ;;  %s757_s1 = inlined_call_operand.vmem [shape: f32[36,128], index: 1, kind: input, shape index: {}]   ;;  %s758_s0 = inlined_call_operand.vmem [shape: f32[128,36], index: 0, kind: input, shape index: {}]   ;;  %s759_s2 = inlined_call_operand.vmem [shape: f32[1,128], index: 2, kind: input, shape index: {}]   ;;  %s760_s3 = inlined_call_operand.vmem [shape: f32[1,128], index: 3, kind: input, shape index: {}]   ;;  %s761_s4 = inlined_call_operand.vmem [shape: f32[1,128], index: 4, kind: input, shape index: {}]   ;;  %s762_s5 = inlined_call_operand.vmem [shape: f32[128,128], index: 5, kind: input, shape index: {}]   ;;  %s763_s6 = inlined_call_operand.vmem [shape: f32[128,128], index: 6, kind: output, shape index: {}]  }
   0x1   :  { %v39_v0 = vld [vmem:[%s757_s1] sm:$0xff]  ;;  %v40_v1 = vld [vmem:[%s757_s1 + $0x8] sm:$0xff]  ;;  %v41_v2 = vld [vmem:[%s757_s1 + $0x10] sm:$0xff] }
   0x2   :  { %v470_v3 = vpack.c.bf16 %v40_v1, %v39_v0  ;;  %v42_v4 = vld [vmem:[%s757_s1 + $0x18] sm:$0xff]  ;;  %v23_v5 = vld [vmem:[%s758_s0] sm:$0xff]  ;;  %v24_v9 = vld [vmem:[%s758_s0 + $0x8] sm:$0xff] }
   0x3   :  { %v474_v6 = vpack.c.bf16 %v42_v4, %v41_v2  ;;  %446 = vmatprep.mubr.msk.f32.mxu0 %vm44_vm0, %v23_v5  ;;  %v31_v7 = vld [vmem:[%s758_s0 + $0x40] sm:$0xff]  ;;  %v32_v10 = vld [vmem:[%s758_s0 + $0x48] sm:$0xff]  ;;  %v25_v11 = vld [vmem:[%s758_s0 + $0x10] sm:$0xff] }
   0x4   :  { %471 = vmatprep.subr.bf16.mxu0 %v470_v3  ;;  %478 = vmatprep.subr.bf16.mxu1 %v470_v3  ;;  %v43_v8 = vld [vmem:[%s757_s1 + $0x20] sm:$0xf]  ;;  %v33_v12 = vld [vmem:[%s758_s0 + $0x50] sm:$0xff]  ;;  %v26_v13 = vld [vmem:[%s758_s0 + $0x18] sm:$0xff] }
   0x5   :  { %473 = vmatpush3.bf16.msra.mxu0 %v470_v3  ;;  %481 = vmatpush3.bf16.msra.mxu1 %v470_v3  ;;  %v34_v14 = vld [vmem:[%s758_s0 + $0x58] sm:$0xff]  ;;  %v27_v15 = vld [vmem:[%s758_s0 + $0x20] sm:$0xff]  ;;  %v28_v17 = vld [vmem:[%s758_s0 + $0x28] sm:$0xff] }
   0x6   :  { %475 = vmatprep.subr.bf16.mxu0 %v474_v6  ;;  %479 = vmatprep.subr.bf16.mxu1 %v474_v6  ;;  %v35_v16 = vld [vmem:[%s758_s0 + $0x60] sm:$0xff]  ;;  %v36_v18 = vld [vmem:[%s758_s0 + $0x68] sm:$0xff]  ;;  %v29_v19 = vld [vmem:[%s758_s0 + $0x30] sm:$0xff] }
   0x7   :  { %458 = vmatprep.mubr.msk.f32.mxu1 %vm44_vm0, %v31_v7  ;;  %v37_v20 = vld [vmem:[%s758_s0 + $0x70] sm:$0xff]  ;;  %v30_v21 = vld [vmem:[%s758_s0 + $0x38] sm:$0xff]  ;;  %v601_v23 = vld [vmem:[%s759_s2] ss:$0 sm:$0xff] }
   0x8   :  { %v38_v22 = vld [vmem:[%s758_s0 + $0x78] sm:$0xff]  ;;  %v606_v25 = vld [vmem:[%s760_s3] ss:$0 sm:$0xff]  ;;  %v344_v41 = vld [vmem:[%s762_s5 + $0x8] sm:$0xff] }
   0x9   :  { %477 = vmatpush3.bf16.msra.mxu0 %v474_v6  ;;  %482 = vmatpush3.bf16.msra.mxu1 %v474_v6  ;;  %v613_v31 = vld [vmem:[%s761_s4] ss:$0 sm:$0xff]  ;;  %v352_v43 = vld [vmem:[%s762_s5 + $0x48] sm:$0xff]  ;;  %v346_v7 = vld [vmem:[%s762_s5 + $0x18] sm:$0xff] }
   0xa   :  { %444 = vmatprep.subr.msk.mxu0 %vm93_vm1, %v43_v8  ;;  %480 = vmatprep.subr.msk.mxu1 %vm93_vm1, %v43_v8  ;;  %v343_v47 = vld [vmem:[%s762_s5] sm:$0xff] }
   0xb   :  { %v351_v49 = vld [vmem:[%s762_s5 + $0x40] sm:$0xff] }
   0xd   :  { %445 = vmatpush3.msk.msra.mxu0 %vm93_vm1, %v43_v8  ;;  %483 = vmatpush3.msk.msra.mxu1 %vm93_vm1, %v43_v8 }
   0xe   :  { %447 = vmatmul.mubr.msk.f32.vlgmr.msra.gmra.mrb[0].mxu0 %vm44_vm0, %v24_v9  ;;  %459 = vmatmul.mubr.msk.f32.vlgmr.msra.gmra.mrb[0].mxu1 %vm44_vm0, %v32_v10  ;;  %v354_v9 = vld [vmem:[%s762_s5 + $0x58] sm:$0xff] }
   0xf   :  { %449 = vmatprep.mubr.msk.f32.mxu0 %vm44_vm0, %v25_v11  ;;  %461 = vmatprep.mubr.msk.f32.mxu1 %vm44_vm0, %v33_v12 }
  0x12   :  { %450 = vmatmul.mubr.msk.f32.gmra.mrb[2].mxu0 %vm44_vm0, %v26_v13  ;;  %462 = vmatmul.mubr.msk.f32.gmra.mrb[2].mxu1 %vm44_vm0, %v34_v14 }
  0x13   :  { %452 = vmatprep.mubr.msk.f32.mxu0 %vm44_vm0, %v27_v15  ;;  %464 = vmatprep.mubr.msk.f32.mxu1 %vm44_vm0, %v35_v16 }
  0x16   :  { %453 = vmatmul.mubr.msk.f32.gmra.mrb[4].mxu0 %vm44_vm0, %v28_v17  ;;  %465 = vmatmul.mubr.msk.f32.gmra.mrb[4].mxu1 %vm44_vm0, %v36_v18 }
  0x17   :  { %455 = vmatprep.mubr.msk.f32.mxu0 %vm44_vm0, %v29_v19  ;;  %467 = vmatprep.mubr.msk.f32.mxu1 %vm44_vm0, %v37_v20 }
  0x1a   :  { %456 = vmatmul.mubr.msk.f32.gmra.mrb[6].mxu0 %vm44_vm0, %v30_v21  ;;  %468 = vmatmul.mubr.msk.f32.gmra.mrb[6].mxu1 %vm44_vm0, %v38_v22 }
  0xe1   :  { %v448_v24 = vpop.f32.mrb[0].mxu0  ;;  %v460_v26 = vpop.f32.mrb[0].mxu1 }
  0xe2   :  { %v250_v27 = vmul.f32 %v448_v24, %v601_v23  ;;  %v258_v28 = vmul.f32 %v460_v26, %v601_v23  ;;  %v163_v29 = vpop.f32.mrb[1].mxu0  ;;  %v203_v30 = vpop.f32.mrb[1].mxu1 }
  0xe3   :  { %v249_v32 = vmul.f32 %v601_v23, %v163_v29  ;;  %v257_v33 = vmul.f32 %v601_v23, %v203_v30  ;;  %v353_v29 = vld [vmem:[%s762_s5 + $0x50] sm:$0xff] }
  0xe4   :  { %v273_v34 = vadd.f32 %v606_v25, %v250_v27  ;;  %v281_v35 = vadd.f32 %v606_v25, %v258_v28  ;;  %v345_v27 = vld [vmem:[%s762_s5 + $0x10] sm:$0xff] }
  0xe5   :  { %v272_v36 = vadd.f32 %v606_v25, %v249_v32  ;;  %v280_v37 = vadd.f32 %v606_v25, %v257_v33  ;;  %v451_v38 = vpop.f32.mrb[2].mxu0  ;;  %v463_v39 = vpop.f32.mrb[2].mxu1  ;;  %v348_v32 = vld [vmem:[%s762_s5 + $0x28] sm:$0xff] }
  0xe6   :  { %vm289_vm2 = vcmp.ge.f32.partialorder %v273_v34, 0.0  ;;  %v312_v40 = vmul.f32 %v613_v31, %v273_v34  ;;  %vm297_vm3 = vcmp.ge.f32.partialorder %v281_v35, 0.0  ;;  %v320_v42 = vmul.f32 %v613_v31, %v281_v35  ;;  %v173_v44 = vpop.f32.mrb[3].mxu0  ;;  %v213_v45 = vpop.f32.mrb[3].mxu1 }
  0xe7   :  { %vm288_vm4 = vcmp.ge.f32.partialorder %v272_v36, 0.0  ;;  %v311_v46 = vmul.f32 %v613_v31, %v272_v36  ;;  %vm296_vm5 = vcmp.ge.f32.partialorder %v280_v37, 0.0  ;;  %v319_v48 = vmul.f32 %v613_v31, %v280_v37 }
  0xe8   :  { %v328_v50 = vsel %vm289_vm2, %v273_v34, %v312_v40  ;;  %v336_v51 = vsel %vm297_vm3, %v281_v35, %v320_v42  ;;  %v252_v52 = vmul.f32 %v451_v38, %v601_v23  ;;  %v260_v53 = vmul.f32 %v463_v39, %v601_v23  ;;  %v356_v35 = vld [vmem:[%s762_s5 + $0x68] sm:$0xff] }
  0xe9   :  { %v360_v54 = vadd.f32 %v344_v41, %v328_v50  ;;  %v368_v55 = vadd.f32 %v352_v43, %v336_v51  ;;  %v327_v56 = vsel %vm288_vm4, %v272_v36, %v311_v46  ;;  %v335_v57 = vsel %vm296_vm5, %v280_v37, %v319_v48  ;;  %v454_v58 = vpop.f32.mrb[4].mxu0  ;;  %v466_v59 = vpop.f32.mrb[4].mxu1  ;;  %v347_v46 = vld [vmem:[%s762_s5 + $0x20] sm:$0xff] }
  0xea   :  { %v359_v60 = vadd.f32 %v343_v47, %v327_v56  ;;  %v367_v61 = vadd.f32 %v351_v49, %v335_v57  ;;  %v275_v62 = vadd.f32 %v606_v25, %v252_v52  ;;  %v283_v63 = vadd.f32 %v606_v25, %v260_v53  ;;  %v183_v0 = vpop.f32.mrb[5].mxu0  ;;  %v223_v1 = vpop.f32.mrb[5].mxu1  ;;  %v355_v48 = vld [vmem:[%s762_s5 + $0x60] sm:$0xff] }
  0xeb   :  { %376 = vst [vmem:[%s763_s6 + $0x8] sm:$0xff] %v360_v54  ;;  %384 = vst [vmem:[%s763_s6 + $0x48] sm:$0xff] %v368_v55  ;;  %v251_v2 = vmul.f32 %v601_v23, %v173_v44  ;;  %v259_v3 = vmul.f32 %v601_v23, %v213_v45  ;;  %v254_v4 = vmul.f32 %v454_v58, %v601_v23 }
  0xec   :  { %v262_v5 = vmul.f32 %v466_v59, %v601_v23  ;;  %375 = vst [vmem:[%s763_s6] sm:$0xff] %v359_v60  ;;  %383 = vst [vmem:[%s763_s6 + $0x40] sm:$0xff] %v367_v61  ;;  %vm291_vm6 = vcmp.ge.f32.partialorder %v275_v62, 0.0  ;;  %v314_v6 = vmul.f32 %v613_v31, %v275_v62  ;;  %vm299_vm7 = vcmp.ge.f32.partialorder %v283_v63, 0.0  ;;  %v350_v61 = vld [vmem:[%s762_s5 + $0x38] sm:$0xff] }
  0xed   :  { %v322_v8 = vmul.f32 %v613_v31, %v283_v63  ;;  %v274_v10 = vadd.f32 %v606_v25, %v251_v2  ;;  %v282_v11 = vadd.f32 %v606_v25, %v259_v3  ;;  %v277_v12 = vadd.f32 %v606_v25, %v254_v4  ;;  %v457_v14 = vpop.f32.mrb[6].mxu0  ;;  %v469_v15 = vpop.f32.mrb[6].mxu1  ;;  %v357_v2 = vld [vmem:[%s762_s5 + $0x70] sm:$0xff] }
  0xee   :  { %v285_v13 = vadd.f32 %v606_v25, %v262_v5  ;;  %v330_v16 = vsel %vm291_vm6, %v275_v62, %v314_v6  ;;  %v253_v18 = vmul.f32 %v601_v23, %v183_v0  ;;  %v261_v19 = vmul.f32 %v601_v23, %v223_v1  ;;  %v193_v20 = vpop.f32.mrb[7].mxu0  ;;  %v233_v21 = vpop.f32.mrb[7].mxu1  ;;  %v349_v0 = vld [vmem:[%s762_s5 + $0x30] sm:$0xff] }
  0xef   :  { %v338_v17 = vsel %vm299_vm7, %v283_v63, %v322_v8  ;;  %v362_v22 = vadd.f32 %v346_v7, %v330_v16  ;;  %vm290_vm8 = vcmp.ge.f32.partialorder %v274_v10, 0.0  ;;  %v313_v26 = vmul.f32 %v613_v31, %v274_v10 }
  0xf0   :  { %v370_v24 = vadd.f32 %v354_v9, %v338_v17  ;;  %vm298_vm9 = vcmp.ge.f32.partialorder %v282_v11, 0.0  ;;  %v321_v28 = vmul.f32 %v613_v31, %v282_v11  ;;  %vm293_vm10 = vcmp.ge.f32.partialorder %v277_v12, 0.0 }
  0xf1   :  { %v316_v30 = vmul.f32 %v613_v31, %v277_v12  ;;  %378 = vst [vmem:[%s763_s6 + $0x18] sm:$0xff] %v362_v22  ;;  %v329_v33 = vsel %vm290_vm8, %v274_v10, %v313_v26  ;;  %vm301_vm11 = vcmp.ge.f32.partialorder %v285_v13, 0.0  ;;  %v324_v34 = vmul.f32 %v613_v31, %v285_v13 }
  0xf2   :  { %386 = vst [vmem:[%s763_s6 + $0x58] sm:$0xff] %v370_v24  ;;  %v276_v36 = vadd.f32 %v606_v25, %v253_v18  ;;  %v361_v37 = vadd.f32 %v345_v27, %v329_v33  ;;  %v337_v38 = vsel %vm298_vm9, %v282_v11, %v321_v28  ;;  %v284_v40 = vadd.f32 %v606_v25, %v261_v19 }
  0xf3   :  { %v332_v39 = vsel %vm293_vm10, %v277_v12, %v316_v30  ;;  %v369_v41 = vadd.f32 %v353_v29, %v337_v38  ;;  %v340_v43 = vsel %vm301_vm11, %v285_v13, %v324_v34  ;;  %v256_v49 = vmul.f32 %v457_v14, %v601_v23 }
  0xf4   :  { %v364_v42 = vadd.f32 %v348_v32, %v332_v39  ;;  %vm292_vm12 = vcmp.ge.f32.partialorder %v276_v36, 0.0  ;;  %377 = vst [vmem:[%s763_s6 + $0x10] sm:$0xff] %v361_v37  ;;  %v372_v44 = vadd.f32 %v356_v35, %v340_v43  ;;  %v315_v45 = vmul.f32 %v613_v31, %v276_v36 }
  0xf5   :  { %vm300_vm13 = vcmp.ge.f32.partialorder %v284_v40, 0.0  ;;  %v323_v47 = vmul.f32 %v613_v31, %v284_v40  ;;  %385 = vst [vmem:[%s763_s6 + $0x50] sm:$0xff] %v369_v41  ;;  %v264_v50 = vmul.f32 %v469_v15, %v601_v23  ;;  %v255_v51 = vmul.f32 %v601_v23, %v193_v20 }
  0xf6   :  { %380 = vst [vmem:[%s763_s6 + $0x28] sm:$0xff] %v364_v42  ;;  %v263_v52 = vmul.f32 %v601_v23, %v233_v21  ;;  %388 = vst [vmem:[%s763_s6 + $0x68] sm:$0xff] %v372_v44  ;;  %v331_v53 = vsel %vm292_vm12, %v276_v36, %v315_v45  ;;  %v279_v57 = vadd.f32 %v606_v25, %v256_v49 }
  0xf7   :  { %v339_v54 = vsel %vm300_vm13, %v284_v40, %v323_v47  ;;  %v363_v55 = vadd.f32 %v347_v46, %v331_v53  ;;  %v287_v58 = vadd.f32 %v606_v25, %v264_v50  ;;  %v278_v59 = vadd.f32 %v606_v25, %v255_v51 }
  0xf8   :  { %v371_v56 = vadd.f32 %v355_v48, %v339_v54  ;;  %v286_v60 = vadd.f32 %v606_v25, %v263_v52  ;;  %vm295_vm14 = vcmp.ge.f32.partialorder %v279_v57, 0.0  ;;  %v318_v23 = vmul.f32 %v613_v31, %v279_v57  ;;  %v358_v25 = vld [vmem:[%s762_s5 + $0x78] sm:$0xff] }
  0xf9   :  { %379 = vst [vmem:[%s763_s6 + $0x20] sm:$0xff] %v363_v55  ;;  %vm303_vm15 = vcmp.ge.f32.partialorder %v287_v58, 0.0  ;;  %v326_v62 = vmul.f32 %v613_v31, %v287_v58  ;;  %vm294_vm0 = vcmp.ge.f32.partialorder %v278_v59, 0.0  ;;  %v317_v63 = vmul.f32 %v613_v31, %v278_v59 }
  0xfa   :  { %387 = vst [vmem:[%s763_s6 + $0x60] sm:$0xff] %v371_v56  ;;  %vm302_vm1 = vcmp.ge.f32.partialorder %v286_v60, 0.0  ;;  %v325_v1 = vmul.f32 %v613_v31, %v286_v60  ;;  %v334_v3 = vsel %vm295_vm14, %v279_v57, %v318_v23 }
  0xfb   :  { %v342_v4 = vsel %vm303_vm15, %v287_v58, %v326_v62  ;;  %v366_v5 = vadd.f32 %v350_v61, %v334_v3  ;;  %v333_v7 = vsel %vm294_vm0, %v278_v59, %v317_v63 }
  0xfc   :  { %v374_v6 = vadd.f32 %v358_v25, %v342_v4  ;;  %v341_v8 = vsel %vm302_vm1, %v286_v60, %v325_v1  ;;  %v365_v9 = vadd.f32 %v349_v0, %v333_v7 }
  0xfd   :  { %v373_v10 = vadd.f32 %v357_v2, %v341_v8  ;;  %382 = vst [vmem:[%s763_s6 + $0x38] sm:$0xff] %v366_v5 }
  0xfe   :  { %390 = vst [vmem:[%s763_s6 + $0x78] sm:$0xff] %v374_v6  ;;  %381 = vst [vmem:[%s763_s6 + $0x30] sm:$0xff] %v365_v9 }
  0xff   :  { %389 = vst [vmem:[%s763_s6 + $0x70] sm:$0xff] %v373_v10 }

</bundles_post_ra>
